<compile_context>
chip_gen: v7x
topology: tpu7x:2x2x1
jax: 0.10.0
libtpu: 0.0.40
codegen_flags: <defaults>
</compile_context>

<pallas_src>
import math

import jax
import jax.numpy as jnp
from jax.experimental import pallas as pl
from jax.experimental.pallas import tpu as pltpu


# ----------------------------------------------------------------------------
# generation-aware budgets & tiling helpers
# ----------------------------------------------------------------------------
_VMEM_CAP_CACHE = {}


def _vmem_budget():
    """Return (vmem_limit_bytes, per-block byte target) for this chip."""
    if "cap" not in _VMEM_CAP_CACHE:
        try:
            cap = int(pltpu.get_tpu_info().vmem_capacity_bytes)
        except Exception:  # unknown backend / interpret mode -> conservative
            cap = 64 * 1024 * 1024
        _VMEM_CAP_CACHE["cap"] = cap
    cap = _VMEM_CAP_CACHE["cap"]
    if cap >= 128 * 1024 * 1024:          # v5e / v6e: 128 MiB physical VMEM
        return 64 * 1024 * 1024, 4 * 1024 * 1024
    return 32 * 1024 * 1024, 2 * 1024 * 1024   # v7x: 64 MiB physical VMEM


def _sublane_align(dtype):
    """Native sublane packing for the dtype: uint8->32, bf16->16, f32->8."""
    return {1: 32, 2: 16, 4: 8}.get(jnp.dtype(dtype).itemsize, 8)


def _choose_tile(dim, row_bytes, align, target_bytes, prefer_multiple_tiles):
    """Largest divisor t of `dim`, multiple of `align` when possible, whose
    block stays under `target_bytes`.  Optionally prefers >= 2 tiles so the
    parallel grid load-balances across 2 TensorCores (v7x)."""
    cap = max(1, target_bytes // max(int(row_bytes), 1))
    divs = [t for t in range(1, dim + 1) if dim % t == 0]
    aligned = [t for t in divs if t % align == 0]
    cands = aligned if aligned else divs
    fits = [t for t in cands if t <= cap]
    if not fits:
        return min(cands)           # never silently exceed the VMEM budget
    if prefer_multiple_tiles:
        multi = [t for t in fits if dim // t >= 2]
        if multi:
            return max(multi)
    return max(fits)


def _scale_bias(mean, std, div):
    """(x/div - mean)/std  ==  x * scale + bias."""
    mean = jnp.asarray(mean, jnp.float32).reshape(-1)
    std = jnp.asarray(std, jnp.float32).reshape(-1)
    scale = 1.0 / (jnp.float32(div) * std)
    bias = -mean / std
    return scale, bias


# ----------------------------------------------------------------------------
# Kernel 1: fused (/255 + normalize) as a single per-channel affine
# ----------------------------------------------------------------------------
def _affine_kernel(sb_ref, x_ref, o_ref):
    C = x_ref.shape[1]
    for c in range(C):                       # static loop, C is tiny (3)
        scale = sb_ref[0, c]
        bias = sb_ref[1, c]
        o_ref[0, c] = (x_ref[0, c].astype(jnp.float32) * scale + bias).astype(o_ref.dtype)


def affine_normalize(x, scale, bias, out_dtype=jnp.float32):
    """x: (N, C, H, W) any dtype -> out_dtype (N, C, H, W) = x*scale[c] + bias[c]."""
    N, C, H, W = x.shape
    out_dtype = jnp.dtype(out_dtype)
    vmem_limit, block_budget = _vmem_budget()
    align = math.lcm(_sublane_align(x.dtype), _sublane_align(out_dtype))
    row_bytes = C * W * (jnp.dtype(x.dtype).itemsize + out_dtype.itemsize)
    tile_h = _choose_tile(H, row_bytes, align, block_budget,
                          prefer_multiple_tiles=(N == 1))

    sb = jnp.stack([scale, bias], axis=0).astype(jnp.float32)   # (2, C) in SMEM
    grid = (N, H // tile_h)
    return pl.pallas_call(
        _affine_kernel,
        out_shape=jax.ShapeDtypeStruct((N, C, H, W), out_dtype),
        grid=grid,
        in_specs=[
            pl.BlockSpec(memory_space=pltpu.MemorySpace.SMEM),
            pl.BlockSpec((1, C, tile_h, W), lambda n, h: (n, 0, h, 0)),
        ],
        out_specs=pl.BlockSpec((1, C, tile_h, W), lambda n, h: (n, 0, h, 0)),
        compiler_params=pltpu.CompilerParams(
            dimension_semantics=("parallel", "parallel"),
            vmem_limit_bytes=vmem_limit,
        ),
    )(sb, x)


# ----------------------------------------------------------------------------
# Kernel 2: fused ('area' downsample + /255 + normalize) in one pass.
# Row pool first (pht @ x), then column pool (@ pw) -- fewer MXU FLOPs.
# One-hot matrices are bf16 (exact) when the input is uint8/bf16; 1/(fh*fw)
# and 1/255 are folded into the per-channel scale, epilogue is one FMA.
# ----------------------------------------------------------------------------
def _area_affine_kernel(sb_ref, x_ref, pht_ref, pw_ref, o_ref):
    p_h = pht_ref[...]                      # (tile_ho, tile_h), compute dtype
    p_w = pw_ref[...]                       # (W, Wo), compute dtype
    cdt = p_h.dtype
    C = x_ref.shape[1]
    for c in range(C):                      # static loop, C is tiny (3)
        xc = x_ref[0, c].astype(cdt)                                        # (tile_h, W)
        y = jnp.dot(p_h, xc, preferred_element_type=jnp.float32)            # (tile_ho, W)
        z = jnp.dot(y.astype(cdt), p_w, preferred_element_type=jnp.float32) # (tile_ho, Wo)
        o_ref[0, c] = (z * sb_ref[0, c] + sb_ref[1, c]).astype(o_ref.dtype)


def area_resize_normalize(x, out_hw, scale, bias, out_dtype=jnp.float32):
    """interpolate(x, size=out_hw, mode='area') followed by x*scale[c]+bias[c],
    fused into one kernel. Integer downsample factors only."""
    N, C, H, W = x.shape
    Ho, Wo = out_hw
    # TODO(synk): non-integer-factor / upsampling 'area' resize not implemented.
    assert H % Ho == 0 and W % Wo == 0, "area resize supports integer downsample factors only"
    fh, fw = H // Ho, W // Wo
    out_dtype = jnp.dtype(out_dtype)

    # uint8 (exact in bf16) and bf16 inputs use bf16 MXU operands; f32 stays f32.
    if jnp.issubdtype(jnp.dtype(x.dtype), jnp.integer) or jnp.dtype(x.dtype) == jnp.dtype(jnp.bfloat16):
        compute_dtype = jnp.bfloat16
    else:
        compute_dtype = jnp.float32

    vmem_limit, block_budget = _vmem_budget()
    align_in = _sublane_align(x.dtype)
    align_ho = math.lcm(_sublane_align(out_dtype), align_in // math.gcd(align_in, fh))
    row_bytes = C * (fh * W * jnp.dtype(x.dtype).itemsize + Wo * out_dtype.itemsize)
    tile_ho = _choose_tile(Ho, row_bytes, align_ho, block_budget,
                           prefer_multiple_tiles=(N == 1))
    tile_h = tile_ho * fh

    # One-hot pooling matrices (row pool tile-local, column pool over full W).
    pht = (jnp.arange(tile_ho)[:, None] == (jnp.arange(tile_h)[None, :] // fh)).astype(compute_dtype)
    pw = ((jnp.arange(W)[:, None] // fw) == jnp.arange(Wo)[None, :]).astype(compute_dtype)

    # Fold the 1/(fh*fw) averaging into the per-channel scale.
    sb = jnp.stack([scale / jnp.float32(fh * fw), bias], axis=0).astype(jnp.float32)

    grid = (N, Ho // tile_ho)
    return pl.pallas_call(
        _area_affine_kernel,
        out_shape=jax.ShapeDtypeStruct((N, C, Ho, Wo), out_dtype),
        grid=grid,
        in_specs=[
            pl.BlockSpec(memory_space=pltpu.MemorySpace.SMEM),
            pl.BlockSpec((1, C, tile_h, W), lambda n, h: (n, 0, h, 0)),
            pl.BlockSpec((tile_ho, tile_h), lambda n, h: (0, 0)),
            pl.BlockSpec((W, Wo), lambda n, h: (0, 0)),
        ],
        out_specs=pl.BlockSpec((1, C, tile_ho, Wo), lambda n, h: (n, 0, h, 0)),
        compiler_params=pltpu.CompilerParams(
            dimension_semantics=("parallel", "parallel"),
            vmem_limit_bytes=vmem_limit,
        ),
    )(sb, x, pht, pw)


# ----------------------------------------------------------------------------
# CellViT wrapper (forward-pass preprocessing semantics of the PyTorch module)
# ----------------------------------------------------------------------------
class CellViTPallas:
    def __init__(self, num_nuclei_classes: int = 6, num_tissue_classes: int = 19):
        # Torch module defaults to mean/std = (0.5, 0.5, 0.5) when absent from config.
        self.mean = jnp.array([0.5, 0.5, 0.5], jnp.float32)
        self.std = jnp.array([0.5, 0.5, 0.5], jnp.float32)
        self.num_nuclei_classes = num_nuclei_classes
        self.num_tissue_classes = num_tissue_classes
        # TODO(synk): CellViTSAM backbone (self.vit) is defined entirely by the external
        # checkpoint config/state_dict and is not specified in the snippet; this wrapper
        # returns the normalized tensor that would be fed to the backbone.

    def __call__(self, x, resize: bool = False, div255: bool = False,
                 resize_hw=(256, 256), out_dtype=jnp.float32):
        # Keep the input dtype (uint8 / bf16 / f32) — the cast happens in-kernel.
        div = 255.0 if div255 else 1.0
        scale, bias = _scale_bias(self.mean, self.std, div)
        if resize:
            # div255 + area resize + normalize fused into ONE kernel.
            return area_resize_normalize(x, resize_hw, scale, bias, out_dtype=out_dtype)
        return affine_normalize(x, scale, bias, out_dtype=out_dtype)


# ----------------------------------------------------------------------------
# Pure-JAX reference for validation
# ----------------------------------------------------------------------------
def _ref_forward(x, mean, std, resize=False, div255=False, resize_hw=None):
    x = x.astype(jnp.float32)
    if div255:
        x = x / 255.0
    if resize:
        N, C, H, W = x.shape
        Ho, Wo = resize_hw
        fh, fw = H // Ho, W // Wo
        x = x.reshape(N, C, Ho, fh, Wo, fw).sum(axis=(3, 5)) / (fh * fw)
    return (x - mean.reshape(1, -1, 1, 1)) / std.reshape(1, -1, 1, 1)


if __name__ == "__main__":
    keys = jax.random.split(jax.random.PRNGKey(0), 5)
    model = CellViTPallas()

    # Path 1: default (resize=False), pixel-valued f32 input, div255=True.
    x1 = jax.random.uniform(keys[0], (2, 3, 16, 16), jnp.float32, 0.0, 255.0)
    y1 = model(x1, resize=False, div255=True)
    jax.block_until_ready(y1)
    y1_ref = _ref_forward(x1, model.mean, model.std, resize=False, div255=True)
    assert y1.shape == (2, 3, 16, 16) and y1.dtype == jnp.float32
    assert jnp.max(jnp.abs(y1 - y1_ref)) < 1e-5

    # Path 2: fused resize (area 32x32 -> 16x16) + normalize, f32 input (f32 MXU path).
    x2 = jax.random.uniform(keys[1], (2, 3, 32, 32), jnp.float32, 0.0, 255.0)
    y2 = model(x2, resize=True, div255=True, resize_hw=(16, 16))
    jax.block_until_ready(y2)
    y2_ref = _ref_forward(x2, model.mean, model.std, resize=True, div255=True, resize_hw=(16, 16))
    assert y2.shape == (2, 3, 16, 16)
    assert jnp.max(jnp.abs(y2 - y2_ref)) < 1e-4

    # Path 3: bf16 input stays narrow into the kernel (bf16 MXU path for resize).
    x3 = jax.random.uniform(keys[2], (2, 3, 32, 128), jnp.float32, 0.0, 255.0).astype(jnp.bfloat16)
    y3 = model(x3, resize=False, div255=True)
    y4 = model(x3, resize=True, div255=True, resize_hw=(16, 64))
    jax.block_until_ready((y3, y4))
    y3_ref = _ref_forward(x3, model.mean, model.std, resize=False, div255=True)
    y4_ref = _ref_forward(x3, model.mean, model.std, resize=True, div255=True, resize_hw=(16, 64))
    assert y3.shape == (2, 3, 32, 128) and y4.shape == (2, 3, 16, 64)
    assert jnp.max(jnp.abs(y3 - y3_ref)) < 1e-5
    assert jnp.max(jnp.abs(y4 - y4_ref)) < 5e-2   # bf16 MXU intermediates

    # Path 4: uint8 input (the common inference case), affine + bf16-output variant.
    x4 = jax.random.randint(keys[3], (2, 3, 64, 128), 0, 256, jnp.uint8)
    y5 = model(x4, resize=False, div255=True)
    y5_bf16 = model(x4, resize=False, div255=True, out_dtype=jnp.bfloat16)
    jax.block_until_ready((y5, y5_bf16))
    y5_ref = _ref_forward(x4, model.mean, model.std, resize=False, div255=True)
    assert y5.dtype == jnp.float32 and y5_bf16.dtype == jnp.bfloat16
    assert jnp.max(jnp.abs(y5 - y5_ref)) < 1e-5
    assert jnp.max(jnp.abs(y5_bf16.astype(jnp.float32) - y5_ref)) < 2e-2

    # Path 5: uint8 fused resize (N=1 exercises the >=2-tile parallel split).
    x5 = jax.random.randint(keys[4], (1, 3, 64, 128), 0, 256, jnp.uint8)
    y6 = model(x5, resize=True, div255=True, resize_hw=(16, 64))
    jax.block_until_ready(y6)
    y6_ref = _ref_forward(x5, model.mean, model.std, resize=True, div255=True, resize_hw=(16, 64))
    assert y6.shape == (1, 3, 16, 64)
    assert jnp.max(jnp.abs(y6 - y6_ref)) < 5e-2   # bf16 MXU intermediates

    print("KERNEL_OK")
</pallas_src>

<mosaic_0001>
module attributes {stable_mosaic.version = 11 : i64} {
  func.func @_affine_kernel(%arg0: i32, %arg1: i32, %arg2: memref<2x3xf32, #tpu.memory_space<smem>>, %arg3: memref<1x3x16x16xf32, #tpu.memory_space<vmem>>, %arg4: memref<1x3x16x16xf32, #tpu.memory_space<vmem>>) attributes {dimension_semantics = [#tpu.dimension_semantics<parallel>, #tpu.dimension_semantics<parallel>], iteration_bounds = array<i64: 2, 1>, scalar_prefetch = 0 : i64, scratch_operands = 0 : i64, tpu.core_type = #tpu.core_type<tc>, window_params = [{transform_indices = @transform_0, window_bounds = array<i64: 2, 3>}, {transform_indices = @transform_1, window_bounds = array<i64: 1, 3, 16, 16>}, {transform_indices = @transform_2, window_bounds = array<i64: 1, 3, 16, 16>}]} {
    %c0 = arith.constant 0 : index
    %c0_0 = arith.constant 0 : index
    %0 = memref.load %arg2[%c0, %c0_0] : memref<2x3xf32, #tpu.memory_space<smem>>
    %c1 = arith.constant 1 : index
    %c0_1 = arith.constant 0 : index
    %1 = memref.load %arg2[%c1, %c0_1] : memref<2x3xf32, #tpu.memory_space<smem>>
    %c0_2 = arith.constant 0 : index
    %c0_3 = arith.constant 0 : index
    %c0_4 = arith.constant 0 : index
    %c0_5 = arith.constant 0 : index
    %2 = vector.load %arg3[%c0_2, %c0_3, %c0_4, %c0_5] : memref<1x3x16x16xf32, #tpu.memory_space<vmem>>, vector<1x1x16x16xf32>
    %3 = vector.shape_cast %2 : vector<1x1x16x16xf32> to vector<16x16xf32>
    %4 = vector.broadcast %0 : f32 to vector<16x16xf32>
    %5 = arith.mulf %3, %4 : vector<16x16xf32>
    %6 = vector.broadcast %1 : f32 to vector<16x16xf32>
    %7 = arith.addf %5, %6 : vector<16x16xf32>
    %c0_6 = arith.constant 0 : index
    %c0_7 = arith.constant 0 : index
    %c0_8 = arith.constant 0 : index
    %c0_9 = arith.constant 0 : index
    %8 = vector.load %arg4[%c0_6, %c0_7, %c0_8, %c0_9] : memref<1x3x16x16xf32, #tpu.memory_space<vmem>>, vector<1x1x16x16xf32>
    %9 = vector.shape_cast %8 : vector<1x1x16x16xf32> to vector<16x16xf32>
    %10 = vector.shape_cast %7 : vector<16x16xf32> to vector<1x1x16x16xf32>
    tpu.vector_store %arg4[%c0_6, %c0_7, %c0_8, %c0_9], %10 {strides = array<i32>} : memref<1x3x16x16xf32, #tpu.memory_space<vmem>>, vector<1x1x16x16xf32>,
    %c0_10 = arith.constant 0 : index
    %c1_11 = arith.constant 1 : index
    %11 = memref.load %arg2[%c0_10, %c1_11] : memref<2x3xf32, #tpu.memory_space<smem>>
    %c1_12 = arith.constant 1 : index
    %c1_13 = arith.constant 1 : index
    %12 = memref.load %arg2[%c1_12, %c1_13] : memref<2x3xf32, #tpu.memory_space<smem>>
    %c0_14 = arith.constant 0 : index
    %c1_15 = arith.constant 1 : index
    %c0_16 = arith.constant 0 : index
    %c0_17 = arith.constant 0 : index
    %13 = vector.load %arg3[%c0_14, %c1_15, %c0_16, %c0_17] : memref<1x3x16x16xf32, #tpu.memory_space<vmem>>, vector<1x1x16x16xf32>
    %14 = vector.shape_cast %13 : vector<1x1x16x16xf32> to vector<16x16xf32>
    %15 = vector.broadcast %11 : f32 to vector<16x16xf32>
    %16 = arith.mulf %14, %15 : vector<16x16xf32>
    %17 = vector.broadcast %12 : f32 to vector<16x16xf32>
    %18 = arith.addf %16, %17 : vector<16x16xf32>
    %c0_18 = arith.constant 0 : index
    %c1_19 = arith.constant 1 : index
    %c0_20 = arith.constant 0 : index
    %c0_21 = arith.constant 0 : index
    %19 = vector.load %arg4[%c0_18, %c1_19, %c0_20, %c0_21] : memref<1x3x16x16xf32, #tpu.memory_space<vmem>>, vector<1x1x16x16xf32>
    %20 = vector.shape_cast %19 : vector<1x1x16x16xf32> to vector<16x16xf32>
    %21 = vector.shape_cast %18 : vector<16x16xf32> to vector<1x1x16x16xf32>
    tpu.vector_store %arg4[%c0_18, %c1_19, %c0_20, %c0_21], %21 {strides = array<i32>} : memref<1x3x16x16xf32, #tpu.memory_space<vmem>>, vector<1x1x16x16xf32>,
    %c0_22 = arith.constant 0 : index
    %c2 = arith.constant 2 : index
    %22 = memref.load %arg2[%c0_22, %c2] : memref<2x3xf32, #tpu.memory_space<smem>>
    %c1_23 = arith.constant 1 : index
    %c2_24 = arith.constant 2 : index
    %23 = memref.load %arg2[%c1_23, %c2_24] : memref<2x3xf32, #tpu.memory_space<smem>>
    %c0_25 = arith.constant 0 : index
    %c2_26 = arith.constant 2 : index
    %c0_27 = arith.constant 0 : index
    %c0_28 = arith.constant 0 : index
    %24 = vector.load %arg3[%c0_25, %c2_26, %c0_27, %c0_28] : memref<1x3x16x16xf32, #tpu.memory_space<vmem>>, vector<1x1x16x16xf32>
    %25 = vector.shape_cast %24 : vector<1x1x16x16xf32> to vector<16x16xf32>
    %26 = vector.broadcast %22 : f32 to vector<16x16xf32>
    %27 = arith.mulf %25, %26 : vector<16x16xf32>
    %28 = vector.broadcast %23 : f32 to vector<16x16xf32>
    %29 = arith.addf %27, %28 : vector<16x16xf32>
    %c0_29 = arith.constant 0 : index
    %c2_30 = arith.constant 2 : index
    %c0_31 = arith.constant 0 : index
    %c0_32 = arith.constant 0 : index
    %30 = vector.load %arg4[%c0_29, %c2_30, %c0_31, %c0_32] : memref<1x3x16x16xf32, #tpu.memory_space<vmem>>, vector<1x1x16x16xf32>
    %31 = vector.shape_cast %30 : vector<1x1x16x16xf32> to vector<16x16xf32>
    %32 = vector.shape_cast %29 : vector<16x16xf32> to vector<1x1x16x16xf32>
    tpu.vector_store %arg4[%c0_29, %c2_30, %c0_31, %c0_32], %32 {strides = array<i32>} : memref<1x3x16x16xf32, #tpu.memory_space<vmem>>, vector<1x1x16x16xf32>,
    return
  }
  func.func @transform_0(%arg0: i32, %arg1: i32) -> (i32, i32) {
    %c0_i32 = arith.constant 0 : i32
    %c0_i32_0 = arith.constant 0 : i32
    %c0_i32_1 = arith.constant 0 : i32
    return %c0_i32, %c0_i32_0 : i32, i32
  }
  func.func @transform_1(%arg0: i32, %arg1: i32) -> (i32, i32, i32, i32) {
    %c0_i32 = arith.constant 0 : i32
    %c0_i32_0 = arith.constant 0 : i32
    %c0_i32_1 = arith.constant 0 : i32
    return %arg0, %c0_i32, %arg1, %c0_i32_0 : i32, i32, i32, i32
  }
  func.func @transform_2(%arg0: i32, %arg1: i32) -> (i32, i32, i32, i32) {
    %c0_i32 = arith.constant 0 : i32
    %c0_i32_0 = arith.constant 0 : i32
    %c0_i32_1 = arith.constant 0 : i32
    return %arg0, %c0_i32, %arg1, %c0_i32_0 : i32, i32, i32, i32
  }
}

</mosaic_0001>

<bundles_post_ra>
// kernel: tpu_custom_call.1
= control target key start
LH: loop header
LB: loop body
LE: loop exit
PB: predicated region body
PF: predicated region fallthrough
CT: control target
= control target key end

     0   :  { %7 = vsyncpa [#allocation5], 0  ;;  %s818_s0 = inlined_call_operand.hbm [shape: f32[2,3], index: 0, kind: input, shape index: {}]   ;;  %s819_s1 = inlined_call_operand.hbm [shape: f32[2,3,16,16], index: 1, kind: input, shape index: {}]   ;;  %s820_s2 = inlined_call_operand.hbm [shape: f32[2,3,16,16], index: 2, kind: output, shape index: {}]  }
   0x1   :  { %8 = vsyncpa [#allocation3], 0 }
   0x2   :  { %10 = vsyncpa [#allocation3 + $0x1], 0 }
   0x3   :  { %11 = vsyncpa [#allocation4], 0 }
   0x4   :  { %13 = vsyncpa [#allocation4 + $0x1], 0  ;;  %s608_s9 = smov 0   ;;  %s610_s10 = smov 0  }
   0x5   :  { %s612_s11 = smov 0   ;;  %s614_s12 = smov 0  }
   0x6   :  { %s616_s13 = smov 0   ;;  %s618_s14 = smov 0  }
   0x7 LB: > { %s350_s15 = sadd.s32 4294967295, %s584_s14   ;;  %s351_s16 = sadd.s32 4294967294, %s584_s14   ;;  %s584_s14 = sphi %s618_s14, %s19_s14   ;;  %s580_s13 = sphi %s616_s13, %s840_s13   ;;  %s576_s12 = sphi %s614_s12, %s839_s12   ;;  %s572_s11 = sphi %s612_s11, %s838_s11   ;;  %s568_s10 = sphi %s610_s10, %s837_s10   ;;  %s564_s9 = sphi %s608_s9, %s836_s9  }
   0x8   : > { %s61_s17 = sadd.s32 1, %s572_s11  ;;  %p68_p0 = scmp.ne.s32.totalorder %s572_s11, %s568_s10 }
   0x9   : > { %p69_p1 = scmp.eq.s32.totalorder %s584_s14, 0  ;;  %p74_p2 = scmp.ne.s32.totalorder %s568_s10, %s564_s9 }
   0xa   : > { %p646_p3 = scmp.eq.s32.totalorder %s350_s15, 0  ;;  %p100_p4 = scmp.eq.s32.totalorder %s350_s15, 1 }
   0xb   : > { %p70_p5 = por %p69_p1, %p68_p0  ;;  %p106_p6 = scmp.eq.s32.totalorder %s351_s16, 1 }
   0xc   : > { %s825_s18 = scalar_select %p646_p3, 1, 0 }
   0xd   : > { %p652_p7 = por %p646_p3, %p74_p2  ;;  %p656_p8 = por %p100_p4, %p68_p0 }
   0xe   : > { %p660_p9 = por %p106_p6, %p74_p2  ;;  %p352_p10 = scmp.ge.s32.totalorder %s584_s14, 1 }
   0xf   : > { %s826_s19 = scalar_select %p652_p7, 1, 0 }
  0x10   : > { %s827_s20 = scalar_select %p656_p8, 1, 0 }
  0x11   : > { %s828_s21 = scalar_select %p660_p9, 1, 0 }
  0x12   : > { %p113_p11 = scmp.lt.s32.totalorder %s584_s14, 3  ;;  %p399_p1 = scmp.lt.s32.totalorder %s584_s14, 2 }
  0x13   : > { %s135_s23 = sand.u32 1, %s572_s11   ;;  %s31_s25 = sadd.s32 1, %s580_s13 }
  0x14   : > { %p667_p13 = pnand %p352_p10, %p113_p11  ;;  %p675_p0 = pnand %p399_p1, %p70_p5 }
  0x15   : > { %s374_s26 = smul.u32 48, %s135_s23  ;;  %p33_p4 = scmp.ge.s32.totalorder %s31_s25, 2 }
  0x16   : > { %p386_p7 = pneg %p667_p13  ;;  %s455_s29 = scalar_lea.hbm %s818_s0, 32 }
  0x17   : > { %p456_p6 = scmp.ne.s32.totalorder %s818_s0, %s455_s29  ;;  %p462_p5 = scmp.lt.u32.totalorder %s455_s29, %s818_s0 }
  0x18   : > { %p387_p2 = pnand %p386_p7, %p646_p3 }
  0x1a   : > { %p457_p10 = pneg %p387_p2 }
  0x1c   : > { %p458_p11 = pnand %p457_p10, %p456_p6 }
  0x1e   : > { %p459_p12 = pneg %p458_p11 }
  0x20   : > { %p464_p1 = pnand %p462_p5, %p459_p12 }
  0x22   : > { %467 = shalt.err (!%p464_p1)
}
  0x23   : > { %s586_s6 = smov [#allocation2]   ;;  %s842_s25 = smov (%p33_p4, %s31_s25), 0 }
  0x24   : > { %389 = dma.hbm_to_smem (!%p387_p2), %s818_s0, 32, %s586_s6, [#allocation5]  }
  0x25   : > { %s375_s15 = smul.u32 768, %s580_s13  ;;  %s56_s16 = ssub.s32 %s580_s13, %s842_s25 }
  0x26   : > { %s139_s27 = scalar_lea.vmem [#allocation6], %s374_s26  ;;  %p59_p7 = scmp.eq.s32.totalorder %s56_s16, 0 }
  0x27   : > { %s148_s28 = sshll.u32 %s139_s27, 4  ;;  %s702_s3 = scalar_lea.hbm %s819_s1, %s375_s15  ;;  %s704_s28 = int_to_ptr.vmem [resolvable:$true] %s148_s28 }
  0x28   : > { %s709_s4 = scalar_select %p59_p7, %s572_s11, %s61_s17  }
  0x29   : > { %s711_s5 = scalar_lea.sflag [#allocation3], %s135_s23  ;;  %s468_s6 = scalar_lea.hbm %s702_s3, 768 }
  0x2a   : > { %p469_p12 = scmp.ne.s32.totalorder %s702_s3, %s468_s6  ;;  %p470_p2 = pneg %p675_p0 }
  0x2b   : > { %s473_s8 = scalar_lea.hbm %s819_s1, 1536  ;;  %p474_p10 = scmp.lt.u32.totalorder %s702_s3, %s819_s1 }
  0x2c   : > { %p471_p4 = pnand %p470_p2, %p469_p12  ;;  %p475_p11 = scmp.lt.u32.totalorder %s473_s8, %s468_s6 }
  0x2d   : > { %p477_p1 = scmp.lt.u32.totalorder %s468_s6, %s702_s3 }
  0x2e   : > { %p472_p6 = pneg %p471_p4  ;;  %p476_p5 = por %p475_p11, %p474_p10 }
  0x30   : > { %p478_p7 = por %p477_p1, %p476_p5 }
  0x32   : > { %p479_p9 = pnand %p478_p7, %p472_p6 }
  0x34   : > { %482 = shalt.err (!%p479_p9)
}
  0x35   : > { %s483_s17 = scalar_lea.vmem %s704_s28, 768  ;;  %s587_s23 = smov [#allocation6]  }
  0x36   : > { %p484_p12 = scmp.ne.s32.totalorder %s704_s28, %s483_s17  ;;  %s488_s27 = sshll.u32 %s587_s23, 4  ;;  %s489_s27 = int_to_ptr.vmem [resolvable:$false] %s488_s27 }
  0x37   : > { %s490_s29 = scalar_lea.vmem %s489_s27, 1536  ;;  %p491_p3 = scmp.lt.s32.totalorder %s704_s28, %s489_s27 }
  0x38   : > { %p486_p4 = pnand %p484_p12, %p470_p2  ;;  %p492_p10 = scmp.lt.s32.totalorder %s490_s29, %s483_s17 }
  0x3a   : > { %p487_p8 = pneg %p486_p4  ;;  %p493_p11 = por %p492_p10, %p491_p3 }
  0x3c   : > { %p494_p5 = pnand %p493_p11, %p487_p8 }
  0x3e   : > { %497 = shalt.err (!%p494_p5)
}
  0x3f   : > { %s588_s30 = smov 128   ;;  %s589_s6 = smov 8  }
  0x40   : > { %393 = dma.hbm_to_vmem [thread:$0]  (!%p675_p0), %s702_s3, 768, %s704_s28, %s711_s5, %s588_s30, %s588_s30, %s589_s6  }
  0x41   : > { %160 = sbr.rel (%p667_p13) target bundleno = 110 (0x6e), region = 28  ;;  %p831_p9 = scmp.ne.s32.totalorder (!%p667_p13), %s825_s18, 0 }
  0x48   : > { %551 = dma.done.wait (%p831_p9), [#allocation5], 32  }
  0x49   : > { %553 = vsyncadd (%p831_p9), [#allocation5], 4294967264  ;;  %s746_s26 = sand.u32 1, %s568_s10   ;;  %p832_p3 = scmp.ne.s32.totalorder %s826_s19, 0 }
  0x4a   : > { %s376_s7 = smul.u32 48, %s746_s26  ;;  %s167_s8 = scalar_lea.sflag [#allocation3], %s746_s26 }
  0x4c   : > { %s170_s15 = scalar_lea.vmem [#allocation6], %s376_s7 }
  0x4d   : > { %555 = dma.done.wait (%p832_p3), %s167_s8, 768  }
  0x4e   : > { %557 = vsyncadd (%p832_p3), %s167_s8, 4294966528 }
  0x4f   : > { %175 = sfence }
  0x50   : > { %s194_s22 = sld [smem:[#allocation2]]  ;;  %s359_s28 = sld [smem:[#allocation2 + $0x1]]  ;;  %v196_v0 = vld [vmem:[%s170_s15] sm:$0xff]  ;;  %v197_v1 = vld [vmem:[%s170_s15 + $0x8] sm:$0xff]  ;;  %v361_v3 = vld [vmem:[%s170_s15 + $0x10] sm:$0xff]  ;;  %vm204_vm0 = vcmask 130048  }
  0x51   : > { %s358_s24 = sld [smem:[#allocation2 + $0x80]]  ;;  %s754_s18 = sld [smem:[#allocation2 + $0x81]]  ;;  %v362_v7 = vld [vmem:[%s170_s15 + $0x18] sm:$0xff]  ;;  %v367_v9 = vld [vmem:[%s170_s15 + $0x20] sm:$0xff]  ;;  %v368_v10 = vld [vmem:[%s170_s15 + $0x28] sm:$0xff] }
  0x52   : > { %s365_s3 = sld [smem:[#allocation2 + $0x2]]  ;;  %s191_s19 = scalar_lea.vmem [#allocation7], %s376_s7 }
  0x53   : > { %s366_s5 = sld [smem:[#allocation2 + $0x82]]  ;;  %s251_s16 = sshll.u32 %s191_s19, 4  ;;  %s759_s16 = int_to_ptr.vmem [resolvable:$true] %s251_s16 }
  0x54   : > { %s377_s17 = smul.u32 768, %s576_s12  ;;  %s236_s29 = scalar_lea.sflag [#allocation4], %s746_s26 }
  0x55   : > { %s498_s30 = scalar_lea.vmem %s759_s16, 768  ;;  %p833_p13 = scmp.ne.s32.totalorder %s827_s20, 0 }
  0x56   : > { %v198_v2 = vstv %s194_s22  ;;  %v212_v8 = vstv %s359_s28  ;;  %s766_s27 = scalar_lea.hbm %s820_s2, %s377_s17  ;;  %p499_p8 = scmp.ne.s32.totalorder %s759_s16, %s498_s30 }
  0x57   : > { %v199_v4 = vmul.f32 %v198_v2, %v196_v0  ;;  %v201_v5 = vstv %s358_s24  ;;  %v200_v6 = vmul.f32 %v198_v2, %v197_v1  ;;  %v213_v13 = vmul.f32 %v361_v3, %v212_v8  ;;  %s590_s6 = smov [#allocation7]  }
  0x58   : > { %v215_v14 = vstv %s754_s18  ;;  %v214_v15 = vmul.f32 %v362_v7, %v212_v8  ;;  %v226_v16 = vstv %s365_s3  ;;  %p500_p0 = pnand %p499_p8, %p833_p13  ;;  %s502_s7 = sshll.u32 %s590_s6, 4  ;;  %s503_s7 = int_to_ptr.vmem [resolvable:$false] %s502_s7 }
  0x59   : > { %v202_v11 = vadd.f32 %v201_v5, %v199_v4  ;;  %v203_v12 = vadd.f32 %v201_v5, %v200_v6  ;;  %v229_v17 = vstv %s366_s5  ;;  %v216_v18 = vadd.f32 %v215_v14, %v213_v13  ;;  %s504_s8 = scalar_lea.vmem %s503_s7, 1536  ;;  %p505_p6 = scmp.lt.s32.totalorder %s759_s16, %s503_s7 }
  0x5a   : > { %v227_v19 = vmul.f32 %v367_v9, %v226_v16  ;;  %v228_v20 = vmul.f32 %v368_v10, %v226_v16  ;;  %v217_v21 = vadd.f32 %v215_v14, %v214_v15  ;;  %p501_p2 = pneg %p500_p0  ;;  %p506_p1 = scmp.lt.s32.totalorder %s504_s8, %s498_s30 }
  0x5b   : > { %205 = vst.msk [vmem:[%s191_s19] sm:$0xff] %vm204_vm0, %v202_v11  ;;  %206 = vst.msk [vmem:[%s191_s19 + $0x8] sm:$0xff] %vm204_vm0, %v203_v12 }
  0x5c   : > { %363 = vst.msk [vmem:[%s191_s19 + $0x10] sm:$0xff] %vm204_vm0, %v216_v18  ;;  %v230_v22 = vadd.f32 %v229_v17, %v227_v19  ;;  %v231_v23 = vadd.f32 %v229_v17, %v228_v20  ;;  %364 = vst.msk [vmem:[%s191_s19 + $0x18] sm:$0xff] %vm204_vm0, %v217_v21  ;;  %p507_p7 = por %p506_p1, %p505_p6 }
  0x5e   : > { %369 = vst.msk [vmem:[%s191_s19 + $0x20] sm:$0xff] %vm204_vm0, %v230_v22  ;;  %370 = vst.msk [vmem:[%s191_s19 + $0x28] sm:$0xff] %vm204_vm0, %v231_v23  ;;  %p508_p12 = pnand %p507_p7, %p501_p2 }
  0x60   : > { %511 = shalt.err (!%p508_p12)
}
  0x61   : > { %s512_s15 = scalar_lea.hbm %s766_s27, 768  ;;  %s516_s28 = scalar_lea.hbm %s820_s2, 1536 }
  0x62   : > { %p513_p4 = scmp.ne.s32.totalorder %s766_s27, %s512_s15  ;;  %p517_p5 = scmp.lt.u32.totalorder %s766_s27, %s820_s2 }
  0x63   : > { %p518_p9 = scmp.lt.u32.totalorder %s516_s28, %s512_s15  ;;  %p520_p8 = scmp.lt.u32.totalorder %s512_s15, %s766_s27 }
  0x64   : > { %p514_p10 = pnand %p513_p4, %p833_p13 }
  0x65   : > { %p519_p3 = por %p518_p9, %p517_p5 }
  0x66   : > { %p515_p11 = pneg %p514_p10 }
  0x67   : > { %p521_p0 = por %p520_p8, %p519_p3 }
  0x69   : > { %p522_p2 = pnand %p521_p0, %p515_p11 }
  0x6b   : > { %525 = shalt.err (!%p522_p2)
}
  0x6c   : > { %s591_s5 = smov 128   ;;  %s592_s19 = smov 8  }
  0x6d   : > { %384 = dma.vmem_to_hbm [thread:$0]  (%p833_p13), %s759_s16, 768, %s766_s27, %s236_s29, %s591_s5, %s591_s5, %s592_s19  }
  0x6e PF: > { %s266_s17 = sand.u32 1, %s564_s9   ;;  %p834_p6 = scmp.ne.s32.totalorder %s828_s21, 0 }
  0x6f   : > { %p835_p1 = scmp.ge.s32.totalorder %s584_s14, 2  ;;  %s267_s12 = scalar_lea.sflag [#allocation4], %s266_s17 }
  0x71   : > { %p395_p7 = pnand %p835_p1, %p834_p6 }
  0x73   : > { %559 = dma.done.wait (!%p395_p7), %s267_s12, 768  }
  0x74   : > { %561 = vsyncadd (!%p395_p7), %s267_s12, 4294966528  ;;  %s19_s14 = sadd.s32 1, %s584_s14   ;;  %s836_s9 = smov %s568_s10 }
  0x75   : > { %p16_p12 = scmp.ge.s32.totalorder %s19_s14, 4   ;;  %s837_s10 = smov %s572_s11 }
  0x76   : > { %s838_s11 = smov %s709_s4  ;;  %s839_s12 = smov %s580_s13 }
  0x77   : > { %s840_s13 = smov %s842_s25  ;;  %18 = sbr.rel (!%p16_p12) target bundleno = 7 (0x7), region = 82 }
  0x7e   :  { %272 = vsyncpa [#allocation3], 1 }
  0x7f   :  { %274 = vsyncpa [#allocation3 + $0x1], 1 }
  0x80   :  { %275 = vsyncpa [#allocation4], 1 }
  0x81   :  { %277 = vsyncpa [#allocation4 + $0x1], 1 }
  0x82   :  { %278 = vsyncpa [#allocation5], 1 }
  0x83   :  { %280 = vsyncpa [#allocation5 + $0x1], 1 }

</bundles_post_ra>
